<compile_context>
chip_gen: v7x
topology: tpu7x:2x2x1
jax: 0.10.0
libtpu: 0.0.40
codegen_flags: <defaults>
</compile_context>

<pallas_src>
import functools

import jax
import jax.numpy as jnp
from jax.experimental import pallas as pl
from jax.experimental.pallas import tpu as pltpu


def _round_up(v, m):
    return -(-v // m) * m


def mlp_kernel(x_ref, w1_ref, b1_ref, w2_ref, b2_ref,
               w3_ref, b3_ref, w4_ref, b4_ref, o_ref):
    """One batch tile of the fused 4-layer MLP (ones-column folded into b1).

    Activations are cast to the weight dtype before each MXU matmul; the
    accumulate / bias-add / ReLU stay in f32 (preferred_element_type)."""
    h = jnp.dot(x_ref[...].astype(w1_ref.dtype), w1_ref[...],
                preferred_element_type=jnp.float32) + b1_ref[...]
    h = jnp.maximum(h, 0.0)
    h = jnp.dot(h.astype(w2_ref.dtype), w2_ref[...],
                preferred_element_type=jnp.float32) + b2_ref[...]
    h = jnp.maximum(h, 0.0)
    h = jnp.dot(h.astype(w3_ref.dtype), w3_ref[...],
                preferred_element_type=jnp.float32) + b3_ref[...]
    h = jnp.maximum(h, 0.0)
    h = jnp.dot(h.astype(w4_ref.dtype), w4_ref[...],
                preferred_element_type=jnp.float32) + b4_ref[...]
    o_ref[...] = h.astype(o_ref.dtype)  # (TB, out_dim) store, no lane padding


def prepare_params(params, compute_dtype=jnp.bfloat16):
    """One-time, off-the-hot-path prep:
       * fold the constant ones-column into the first-layer bias
         (eliminates the concat entirely),
       * cast weights to the compute dtype (bf16 for v6e/v7x, f32 for v5e),
       * keep biases in f32 (bias-add happens on the f32 accumulator)."""
    (w1, b1), (w2, b2), (w3, b3), (w4, b4) = params
    w1_x = w1[:-1, :].astype(compute_dtype)       # (in_dim, 64)
    b1_eff = (b1 + w1[-1:, :]).astype(jnp.float32)  # (1, 64)
    return (
        (w1_x, b1_eff),
        (w2.astype(compute_dtype), b2.astype(jnp.float32)),
        (w3.astype(compute_dtype), b3.astype(jnp.float32)),
        (w4.astype(compute_dtype), b4.astype(jnp.float32)),
    )


@functools.partial(jax.jit, static_argnames=("tb_cap",))
def neural_net_forward(x, prepared, tb_cap=2048):
    """Reproduces neuralNet.forward using a single fused Pallas kernel."""
    (w1, b1), (w2, b2), (w3, b3), (w4, b4) = prepared
    B, in_dim = x.shape
    out_dim = w4.shape[1]

    # Batch tile: multiple of 8 sublanes, capped at tb_cap, and sized so the
    # grid has >= 2 steps whenever B allows it (v7x has 2 TensorCores).
    tb = max(8, min(tb_cap, _round_up(pl.cdiv(B, 2), 8), _round_up(B, 8)))
    grid = (pl.cdiv(B, tb),)  # ragged tail handled by Pallas (masked writeback)

    def resident(arr):
        # Same block index every grid step -> weights/biases stay VMEM-resident.
        return pl.BlockSpec(arr.shape, lambda i: (0, 0))

    weight_bytes = sum(
        w.size * jnp.dtype(w.dtype).itemsize + b.size * jnp.dtype(b.dtype).itemsize
        for w, b in ((w1, b1), (w2, b2), (w3, b3), (w4, b4)))
    cost = pl.CostEstimate(
        flops=2 * B * (in_dim * 64 + 64 * 64 + 64 * 32 + 32 * out_dim),
        transcendentals=0,
        bytes_accessed=(B * in_dim * jnp.dtype(x.dtype).itemsize
                        + B * out_dim * 4
                        + weight_bytes),
    )

    out = pl.pallas_call(
        mlp_kernel,
        out_shape=jax.ShapeDtypeStruct((B, out_dim), jnp.float32),
        grid=grid,
        in_specs=[
            pl.BlockSpec((tb, in_dim), lambda i: (i, 0)),   # x: tiled over batch
            resident(w1), resident(b1),
            resident(w2), resident(b2),
            resident(w3), resident(b3),
            resident(w4), resident(b4),
        ],
        out_specs=pl.BlockSpec((tb, out_dim), lambda i: (i, 0)),
        compiler_params=pltpu.CompilerParams(
            dimension_semantics=("parallel",)),
        cost_estimate=cost,
    )(x, w1, b1, w2, b2, w3, b3, w4, b4)

    return out


def init_linear(key, fan_in, fan_out):
    """Deterministic init matching torch.nn.Linear default bounds (+-1/sqrt(fan_in)).
    Weight pre-transposed to [in, out]; bias as [1, out] (2-D for TPU lanes)."""
    kw, kb = jax.random.split(key)
    bound = 1.0 / jnp.sqrt(fan_in)
    w = jax.random.uniform(kw, (fan_in, fan_out), jnp.float32, -bound, bound)
    b = jax.random.uniform(kb, (1, fan_out), jnp.float32, -bound, bound)
    return w, b


def make_params(key, in_dim, out_dim):
    k1, k2, k3, k4 = jax.random.split(key, 4)
    return (
        init_linear(k1, in_dim + 1, 64),   # input_layer
        init_linear(k2, 64, 64),           # hidden_layer1
        init_linear(k3, 64, 32),           # hidden_layer2
        init_linear(k4, 32, out_dim),      # outLayer
    )


def reference_forward(x, params):
    """Pure-JAX reference of the PyTorch forward, for a correctness check."""
    (w1, b1), (w2, b2), (w3, b3), (w4, b4) = params
    x = jnp.concatenate([x, jnp.ones((x.shape[0], 1), dtype=x.dtype)], axis=1)
    x = jax.nn.relu(x @ w1 + b1)
    x = jax.nn.relu(x @ w2 + b2)
    x = jax.nn.relu(x @ w3 + b3)
    return x @ w4 + b4


if __name__ == "__main__":
    in_dim, out_dim, batch = 7, 4, 8
    key = jax.random.PRNGKey(0)
    k_x, k_p = jax.random.split(key)
    x = jax.random.normal(k_x, (batch, in_dim), jnp.float32)
    params = make_params(k_p, in_dim, out_dim)
    ref = reference_forward(x, params)

    # f32 compute path (v5e default): tight check against the pure-JAX reference.
    out_f32 = jax.block_until_ready(
        neural_net_forward(x, prepare_params(params, jnp.float32)))
    assert out_f32.shape == (batch, out_dim)
    assert jnp.allclose(out_f32, ref, atol=1e-5, rtol=1e-5)

    # bf16 compute path (v6e/v7x fast path): f32 accumulation, looser tolerance.
    out_bf16 = jax.block_until_ready(
        neural_net_forward(x, prepare_params(params, jnp.bfloat16)))
    assert out_bf16.shape == (batch, out_dim)
    assert jnp.allclose(out_bf16, ref, atol=5e-2, rtol=5e-2)

    print("KERNEL_OK")
</pallas_src>

<mosaic_0001>
module attributes {stable_mosaic.version = 11 : i64} {
  func.func @mlp_kernel(%arg0: i32, %arg1: memref<8x7xf32, #tpu.memory_space<vmem>>, %arg2: memref<7x64xf32, #tpu.memory_space<vmem>>, %arg3: memref<1x64xf32, #tpu.memory_space<vmem>>, %arg4: memref<64x64xf32, #tpu.memory_space<vmem>>, %arg5: memref<1x64xf32, #tpu.memory_space<vmem>>, %arg6: memref<64x32xf32, #tpu.memory_space<vmem>>, %arg7: memref<1x32xf32, #tpu.memory_space<vmem>>, %arg8: memref<32x4xf32, #tpu.memory_space<vmem>>, %arg9: memref<1x4xf32, #tpu.memory_space<vmem>>, %arg10: memref<8x4xf32, #tpu.memory_space<vmem>>) attributes {dimension_semantics = [#tpu.dimension_semantics<parallel>], iteration_bounds = array<i64: 1>, scalar_prefetch = 0 : i64, scratch_operands = 0 : i64, tpu.core_type = #tpu.core_type<tc>, window_params = [{transform_indices = @transform_0, window_bounds = array<i64: 8, 7>}, {pipeline_mode = #tpu.pipeline_mode<synchronous>, transform_indices = @transform_1, window_bounds = array<i64: 7, 64>}, {pipeline_mode = #tpu.pipeline_mode<synchronous>, transform_indices = @transform_2, window_bounds = array<i64: 1, 64>}, {pipeline_mode = #tpu.pipeline_mode<synchronous>, transform_indices = @transform_3, window_bounds = array<i64: 64, 64>}, {pipeline_mode = #tpu.pipeline_mode<synchronous>, transform_indices = @transform_4, window_bounds = array<i64: 1, 64>}, {pipeline_mode = #tpu.pipeline_mode<synchronous>, transform_indices = @transform_5, window_bounds = array<i64: 64, 32>}, {pipeline_mode = #tpu.pipeline_mode<synchronous>, transform_indices = @transform_6, window_bounds = array<i64: 1, 32>}, {pipeline_mode = #tpu.pipeline_mode<synchronous>, transform_indices = @transform_7, window_bounds = array<i64: 32, 4>}, {pipeline_mode = #tpu.pipeline_mode<synchronous>, transform_indices = @transform_8, window_bounds = array<i64: 1, 4>}, {transform_indices = @transform_9, window_bounds = array<i64: 8, 4>}]} {
    %c0 = arith.constant 0 : index
    %c0_0 = arith.constant 0 : index
    %0 = vector.load %arg1[%c0, %c0_0] : memref<8x7xf32, #tpu.memory_space<vmem>>, vector<8x7xf32>
    %c0_1 = arith.constant 0 : index
    %c0_2 = arith.constant 0 : index
    %1 = vector.load %arg2[%c0_1, %c0_2] : memref<7x64xf32, #tpu.memory_space<vmem>>, vector<7x64xf32>
    %cst = arith.constant dense<0.000000e+00> : vector<8x64xf32>
    %2 = tpu.matmul %0, %1, %cst {dimension_numbers = #tpu.dot_dimension_numbers<[1], [0], [0], [1], [0, 0, 1, 1], [], []>} : vector<8x7xf32>, vector<7x64xf32>, vector<8x64xf32> -> vector<8x64xf32>
    %c0_3 = arith.constant 0 : index
    %c0_4 = arith.constant 0 : index
    %3 = vector.load %arg3[%c0_3, %c0_4] : memref<1x64xf32, #tpu.memory_space<vmem>>, vector<1x64xf32>
    %4 = vector.broadcast %3 : vector<1x64xf32> to vector<8x64xf32>
    %5 = arith.addf %2, %4 : vector<8x64xf32>
    %cst_5 = arith.constant 0.000000e+00 : f32
    %6 = vector.broadcast %cst_5 : f32 to vector<8x64xf32>
    %7 = arith.maximumf %5, %6 : vector<8x64xf32>
    %c0_6 = arith.constant 0 : index
    %c0_7 = arith.constant 0 : index
    %8 = vector.load %arg4[%c0_6, %c0_7] : memref<64x64xf32, #tpu.memory_space<vmem>>, vector<64x64xf32>
    %cst_8 = arith.constant dense<0.000000e+00> : vector<8x64xf32>
    %9 = tpu.matmul %7, %8, %cst_8 {dimension_numbers = #tpu.dot_dimension_numbers<[1], [0], [0], [1], [0, 0, 1, 1], [], []>} : vector<8x64xf32>, vector<64x64xf32>, vector<8x64xf32> -> vector<8x64xf32>
    %c0_9 = arith.constant 0 : index
    %c0_10 = arith.constant 0 : index
    %10 = vector.load %arg5[%c0_9, %c0_10] : memref<1x64xf32, #tpu.memory_space<vmem>>, vector<1x64xf32>
    %11 = vector.broadcast %10 : vector<1x64xf32> to vector<8x64xf32>
    %12 = arith.addf %9, %11 : vector<8x64xf32>
    %cst_11 = arith.constant 0.000000e+00 : f32
    %13 = vector.broadcast %cst_11 : f32 to vector<8x64xf32>
    %14 = arith.maximumf %12, %13 : vector<8x64xf32>
    %c0_12 = arith.constant 0 : index
    %c0_13 = arith.constant 0 : index
    %15 = vector.load %arg6[%c0_12, %c0_13] : memref<64x32xf32, #tpu.memory_space<vmem>>, vector<64x32xf32>
    %cst_14 = arith.constant dense<0.000000e+00> : vector<8x32xf32>
    %16 = tpu.matmul %14, %15, %cst_14 {dimension_numbers = #tpu.dot_dimension_numbers<[1], [0], [0], [1], [0, 0, 1, 1], [], []>} : vector<8x64xf32>, vector<64x32xf32>, vector<8x32xf32> -> vector<8x32xf32>
    %c0_15 = arith.constant 0 : index
    %c0_16 = arith.constant 0 : index
    %17 = vector.load %arg7[%c0_15, %c0_16] : memref<1x32xf32, #tpu.memory_space<vmem>>, vector<1x32xf32>
    %18 = vector.broadcast %17 : vector<1x32xf32> to vector<8x32xf32>
    %19 = arith.addf %16, %18 : vector<8x32xf32>
    %cst_17 = arith.constant 0.000000e+00 : f32
    %20 = vector.broadcast %cst_17 : f32 to vector<8x32xf32>
    %21 = arith.maximumf %19, %20 : vector<8x32xf32>
    %c0_18 = arith.constant 0 : index
    %c0_19 = arith.constant 0 : index
    %22 = vector.load %arg8[%c0_18, %c0_19] : memref<32x4xf32, #tpu.memory_space<vmem>>, vector<32x4xf32>
    %cst_20 = arith.constant dense<0.000000e+00> : vector<8x4xf32>
    %23 = tpu.matmul %21, %22, %cst_20 {dimension_numbers = #tpu.dot_dimension_numbers<[1], [0], [0], [1], [0, 0, 1, 1], [], []>} : vector<8x32xf32>, vector<32x4xf32>, vector<8x4xf32> -> vector<8x4xf32>
    %c0_21 = arith.constant 0 : index
    %c0_22 = arith.constant 0 : index
    %24 = vector.load %arg9[%c0_21, %c0_22] : memref<1x4xf32, #tpu.memory_space<vmem>>, vector<1x4xf32>
    %25 = vector.broadcast %24 : vector<1x4xf32> to vector<8x4xf32>
    %26 = arith.addf %23, %25 : vector<8x4xf32>
    %c0_23 = arith.constant 0 : index
    %c0_24 = arith.constant 0 : index
    %27 = vector.load %arg10[%c0_23, %c0_24] : memref<8x4xf32, #tpu.memory_space<vmem>>, vector<8x4xf32>
    tpu.vector_store %arg10[%c0_23, %c0_24], %26 {strides = array<i32>} : memref<8x4xf32, #tpu.memory_space<vmem>>, vector<8x4xf32>,
    return
  }
  func.func @transform_0(%arg0: i32) -> (i32, i32) {
    %c0_i32 = arith.constant 0 : i32
    %c0_i32_0 = arith.constant 0 : i32
    return %arg0, %c0_i32 : i32, i32
  }
  func.func @transform_1(%arg0: i32) -> (i32, i32) {
    %c0_i32 = arith.constant 0 : i32
    %c0_i32_0 = arith.constant 0 : i32
    %c0_i32_1 = arith.constant 0 : i32
    return %c0_i32, %c0_i32_0 : i32, i32
  }
  func.func @transform_2(%arg0: i32) -> (i32, i32) {
    %c0_i32 = arith.constant 0 : i32
    %c0_i32_0 = arith.constant 0 : i32
    %c0_i32_1 = arith.constant 0 : i32
    return %c0_i32, %c0_i32_0 : i32, i32
  }
  func.func @transform_3(%arg0: i32) -> (i32, i32) {
    %c0_i32 = arith.constant 0 : i32
    %c0_i32_0 = arith.constant 0 : i32
    %c0_i32_1 = arith.constant 0 : i32
    return %c0_i32, %c0_i32_0 : i32, i32
  }
  func.func @transform_4(%arg0: i32) -> (i32, i32) {
    %c0_i32 = arith.constant 0 : i32
    %c0_i32_0 = arith.constant 0 : i32
    %c0_i32_1 = arith.constant 0 : i32
    return %c0_i32, %c0_i32_0 : i32, i32
  }
  func.func @transform_5(%arg0: i32) -> (i32, i32) {
    %c0_i32 = arith.constant 0 : i32
    %c0_i32_0 = arith.constant 0 : i32
    %c0_i32_1 = arith.constant 0 : i32
    return %c0_i32, %c0_i32_0 : i32, i32
  }
  func.func @transform_6(%arg0: i32) -> (i32, i32) {
    %c0_i32 = arith.constant 0 : i32
    %c0_i32_0 = arith.constant 0 : i32
    %c0_i32_1 = arith.constant 0 : i32
    return %c0_i32, %c0_i32_0 : i32, i32
  }
  func.func @transform_7(%arg0: i32) -> (i32, i32) {
    %c0_i32 = arith.constant 0 : i32
    %c0_i32_0 = arith.constant 0 : i32
    %c0_i32_1 = arith.constant 0 : i32
    return %c0_i32, %c0_i32_0 : i32, i32
  }
  func.func @transform_8(%arg0: i32) -> (i32, i32) {
    %c0_i32 = arith.constant 0 : i32
    %c0_i32_0 = arith.constant 0 : i32
    %c0_i32_1 = arith.constant 0 : i32
    return %c0_i32, %c0_i32_0 : i32, i32
  }
  func.func @transform_9(%arg0: i32) -> (i32, i32) {
    %c0_i32 = arith.constant 0 : i32
    %c0_i32_0 = arith.constant 0 : i32
    return %arg0, %c0_i32 : i32, i32
  }
}

</mosaic_0001>

<bundles_post_ra>
// kernel: neural_net_forward.1
= control target key start
LH: loop header
LB: loop body
LE: loop exit
PB: predicated region body
PF: predicated region fallthrough
CT: control target
= control target key end

     0   :  { %vm45_vm0 = vcmask 1046528   ;;  %vm41_vm1 = vcmask 56320   ;;  %v511_v0 = vmov 0.0   ;;  %vm512_vm2 = vmmov 0   ;;  %s651_s1 = inlined_call_operand.vmem [shape: f32[7,64], index: 1, kind: input, shape index: {}]   ;;  %s652_s0 = inlined_call_operand.vmem [shape: f32[8,7], index: 0, kind: input, shape index: {}]   ;;  %s653_s3 = inlined_call_operand.vmem [shape: f32[64,64], index: 3, kind: input, shape index: {}]   ;;  %s654_s5 = inlined_call_operand.vmem [shape: f32[64,32], index: 5, kind: input, shape index: {}]   ;;  %s655_s2 = inlined_call_operand.vmem [shape: f32[1,64], index: 2, kind: input, shape index: {}]   ;;  %s656_s7 = inlined_call_operand.vmem [shape: f32[32,4], index: 7, kind: input, shape index: {}]   ;;  %s657_s4 = inlined_call_operand.vmem [shape: f32[1,64], index: 4, kind: input, shape index: {}]   ;;  %s658_s6 = inlined_call_operand.vmem [shape: f32[1,32], index: 6, kind: input, shape index: {}]   ;;  %s659_s8 = inlined_call_operand.vmem [shape: f32[1,4], index: 8, kind: input, shape index: {}]   ;;  %s660_s9 = inlined_call_operand.vmem [shape: f32[8,4], index: 9, kind: output, shape index: {}]  }
   0x1   :  { %424 = vmatprep.subr.mxu0 %v511_v0  ;;  %v33_v1 = vld [vmem:[%s651_s1] sm:$0x7f]  ;;  %426 = vmatprep.mubr.msk.f32.mxu0 %vm512_vm2, %v511_v0  ;;  %v513_v4 = vmov 0.0|0.0   ;;  %v121_v5 = vld [vmem:[%s653_s3 + $0x8] sm:$0xff]  ;;  %v122_v6 = vld [vmem:[%s653_s3 + $0x10] sm:$0xff]  ;;  %vm135_vm3 = vcmask 523264  }
   0x2   :  { %v32_v2 = vld [vmem:[%s652_s0] sm:$0xff]  ;;  %425 = vmatpush3.msk.msra.mxu0 %vm45_vm0, %v33_v1  ;;  %478 = vmatprep.subr.bf16.mxu1 %v513_v4  ;;  %v123_v7 = vld [vmem:[%s653_s3 + $0x18] sm:$0xff]  ;;  %v125_v11 = vld [vmem:[%s653_s3 + $0x28] sm:$0xff]  ;;  %vm310_vm4 = vcmask 261120   ;;  %vm384_vm5 = vcmask 31744  }
   0x3   :  { %v120_v3 = vld [vmem:[%s653_s3] sm:$0xff]  ;;  %427 = vmatmul.mubr.msk.f32.vlgmr.msra.gmra.mrb[0].mxu0 %vm41_vm1, %v32_v2  ;;  %445 = vmatprep.mubr.msk.f32.mxu1 %vm512_vm2, %v511_v0  ;;  %v482_v9 = vpack.c.bf16 %v123_v7, %v122_v6  ;;  %v126_v13 = vld [vmem:[%s653_s3 + $0x30] sm:$0xff]  ;;  %v127_v14 = vld [vmem:[%s653_s3 + $0x38] sm:$0xff] }
   0x4   :  { %v479_v8 = vpack.c.bf16 %v121_v5, %v120_v3  ;;  %490 = vmatprep.subr.bf16.mxu0 %v513_v4  ;;  %464 = vmatprep.mubr.msk.f32.mxu0 %vm512_vm2, %v511_v0  ;;  %v124_v10 = vld [vmem:[%s653_s3 + $0x20] sm:$0xff]  ;;  %v488_v15 = vpack.c.bf16 %v127_v14, %v126_v13  ;;  %v211_v17 = vld [vmem:[%s654_s5 + $0x8] sm:$0xff]  ;;  %v212_v18 = vld [vmem:[%s654_s5 + $0x10] sm:$0xff] }
   0x5   :  { %v485_v12 = vpack.c.bf16 %v125_v11, %v124_v10  ;;  %v210_v16 = vld [vmem:[%s654_s5] sm:$0xff]  ;;  %v213_v20 = vld [vmem:[%s654_s5 + $0x18] sm:$0xff]  ;;  %v215_v23 = vld [vmem:[%s654_s5 + $0x28] sm:$0xff] }
   0x6   :  { %480 = vmatpush3.bf16.msra.mxu1 %v479_v8  ;;  %v491_v19 = vpack.c.bf16 %v211_v17, %v210_v16  ;;  %v494_v21 = vpack.c.bf16 %v213_v20, %v212_v18  ;;  %v214_v22 = vld [vmem:[%s654_s5 + $0x20] sm:$0xff]  ;;  %v216_v30 = vld [vmem:[%s654_s5 + $0x30] sm:$0xff]  ;;  %v217_v31 = vld [vmem:[%s654_s5 + $0x38] sm:$0xff] }
   0x7   :  { %481 = vmatprep.subr.bf16.mxu1 %v513_v4  ;;  %v497_v24 = vpack.c.bf16 %v215_v23, %v214_v22  ;;  %v390_v25 = vld [vmem:[%s655_s2] ss:$0 sm:$0xff]  ;;  %v500_v32 = vpack.c.bf16 %v217_v31, %v216_v30  ;;  %v300_v34 = vld [vmem:[%s656_s7 + $0x8] sm:$0xff]  ;;  %v301_v41 = vld [vmem:[%s656_s7 + $0x10] sm:$0xff] }
   0x8   :  { %492 = vmatpush3.bf16.msra.mxu0 %v491_v19  ;;  %v299_v33 = vld [vmem:[%s656_s7] sm:$0xff]  ;;  %v302_v42 = vld [vmem:[%s656_s7 + $0x18] sm:$0xff] }
   0x9   :  { %493 = vmatprep.subr.bf16.mxu0 %v513_v4  ;;  %v503_v35 = vpack.c.bf16 %v300_v34, %v299_v33  ;;  %v393_v36 = vld [vmem:[%s657_s4] ss:$0 sm:$0xff]  ;;  %v506_v43 = vpack.c.bf16 %v302_v42, %v301_v41 }
   0xa   :  { %483 = vmatpush3.bf16.msra.mxu1 %v482_v9  ;;  %v395_v44 = vld [vmem:[%s658_s6] ss:$0 sm:$0xff] }
   0xb   :  { %484 = vmatprep.subr.bf16.mxu1 %v513_v4  ;;  %v397_v49 = vld [vmem:[%s659_s8] ss:$0 sm:$0xff] }
   0xc   :  { %495 = vmatpush3.bf16.msra.mxu0 %v494_v21 }
   0xd   :  { %496 = vmatprep.subr.bf16.mxu0 %v513_v4 }
   0xe   :  { %486 = vmatpush3.bf16.msra.mxu1 %v485_v12 }
   0xf   :  { %487 = vmatprep.subr.bf16.mxu1 %v513_v4 }
  0x10   :  { %498 = vmatpush3.bf16.msra.mxu0 %v497_v24 }
  0x11   :  { %499 = vmatprep.subr.bf16.mxu0 %v513_v4 }
  0x12   :  { %489 = vmatpush3.bf16.msra.mxu1 %v488_v15 }
  0x13   :  { %502 = vmatprep.subr.bf16.mxu1 %v513_v4 }
  0x14   :  { %501 = vmatpush3.bf16.msra.mxu0 %v500_v32 }
  0xd6   :  { %v115_v26 = vpop.f32.mrb[0].mxu0 }
  0xd7   :  { %v116_v27 = vadd.f32 %v390_v25, %v115_v26  ;;  %v428_v28 = vpop.f32.mrb[1].mxu0 }
  0xd9   :  { %v119_v29 = vmax.f32 %v116_v27, 0.0 }
  0xdb   :  { %446 = vmatmul.mubr.msk.f32.vlgmr.msra.gmra.mrb[0].mxu1 %vm135_vm3, %v119_v29 }
  0xdc   :  { %475 = vmatprep.mubr.msk.f32.mxu1 %vm512_vm2, %v511_v0  ;;  %504 = vmatpush3.bf16.msra.mxu1 %v503_v35 }
  0xdd   :  { %505 = vmatprep.subr.bf16.mxu1 %v513_v4 }
  0xe0   :  { %507 = vmatpush3.bf16.msra.mxu1 %v506_v43 }
 0x1ae   :  { %v205_v37 = vpop.f32.mrb[0].mxu1 }
 0x1af   :  { %v206_v38 = vadd.f32 %v393_v36, %v205_v37  ;;  %v447_v39 = vpop.f32.mrb[1].mxu1 }
 0x1b1   :  { %v209_v40 = vmax.f32 %v206_v38, 0.0 }
 0x1b3   :  { %465 = vmatmul.mubr.msk.f32.vlgmr.msra.gmra.mrb[2].mxu0 %vm135_vm3, %v209_v40 }
 0x286   :  { %v294_v45 = vpop.f32.mrb[2].mxu0 }
 0x287   :  { %v295_v46 = vadd.f32 %v395_v44, %v294_v45  ;;  %v466_v47 = vpop.f32.mrb[3].mxu0 }
 0x289   :  { %v298_v48 = vmax.f32 %v295_v46, 0.0 }
 0x28b   :  { %476 = vmatmul.mubr.msk.f32.vlgmr.msra.gmra.mrb[2].mxu1 %vm310_vm4, %v298_v48 }
 0x35e   :  { %v380_v50 = vpop.f32.mrb[2].mxu1 }
 0x35f   :  { %v381_v51 = vadd.f32 %v397_v49, %v380_v50  ;;  %v477_v52 = vpop.f32.mrb[3].mxu1 }
 0x361   :  { %385 = vst.msk [vmem:[%s660_s9] sm:$0xff] %vm384_vm5, %v381_v51 }

</bundles_post_ra>
